<compile_context>
chip_gen: v7x
topology: tpu7x:2x2x1
jax: 0.10.0
libtpu: 0.0.40
codegen_flags: <defaults>
</compile_context>

<pallas_src>
import math

import jax
import jax.numpy as jnp
from jax.experimental import pallas as pl
from jax.experimental.pallas import tpu as pltpu

_LANE = 128
_MAX_LANE_WIDTH = 2048                  # target lane-dense width (multiple of 128)
_BLOCK_BYTE_BUDGET = 4 * 1024 * 1024    # ~4 MiB/block -> ~16 MiB with double buffering
                                        # (fits scoped VMEM on v5e/v6e/v7x)


def _identity_copy_kernel(x_ref, o_ref):
    # Straight VMEM tile copy of the current (TR, L) block.
    o_ref[...] = x_ref[...]


def _choose_layout(total_elems: int, last_dim: int, itemsize: int):
    """Pick a lane-dense (rows, L) view and a row-tile TR for the streaming copy."""
    if total_elems % _LANE == 0:
        # Largest multiple of 128 (capped at _MAX_LANE_WIDTH) that divides the
        # element count -> unmasked, lane-dense vector stores.
        L = _LANE
        for k in range(min(total_elems // _LANE, _MAX_LANE_WIDTH // _LANE), 0, -1):
            if total_elems % (_LANE * k) == 0:
                L = _LANE * k
                break
    else:
        # Fall back to the original last dim (full-extent lane dim is always legal).
        L = last_dim
    rows = total_elems // L

    max_rows = max(1, _BLOCK_BYTE_BUDGET // (L * itemsize))
    if max_rows >= rows:
        TR = rows                          # one block covers everything (full-extent)
    else:
        TR = max(8, (max_rows // 8) * 8)   # keep block rows a multiple of 8
    return rows, L, TR


def identity_projection(x: jax.Array, seq_id=None, *, materialize: bool = False) -> jax.Array:
    """Pallas implementation of IdentityProjection.forward.

    x: float array of shape [*batch, group, hpg, seq, dim]
    seq_id: accepted and ignored (matching the PyTorch module).
    materialize: if False (recommended), the identity is a metadata no-op and
      `x` is returned directly with zero HBM traffic. If True, a fresh buffer
      is produced by a lane-dense Pallas copy kernel.
    """
    del seq_id  # unused, as in the reference module
    if not materialize:
        # Identity is a no-op in JAX: no copy, no HBM traffic.
        return x

    total = math.prod(x.shape)
    rows, L, TR = _choose_layout(total, x.shape[-1], jnp.dtype(x.dtype).itemsize)
    x2d = x.reshape(rows, L)

    out2d = pl.pallas_call(
        _identity_copy_kernel,
        out_shape=jax.ShapeDtypeStruct((rows, L), x.dtype),
        grid=(pl.cdiv(rows, TR),),
        in_specs=[pl.BlockSpec((TR, L), lambda i: (i, 0))],
        out_specs=pl.BlockSpec((TR, L), lambda i: (i, 0)),
        compiler_params=pltpu.CompilerParams(
            dimension_semantics=("parallel",),        # allow megacore sharding
            vmem_limit_bytes=32 * 1024 * 1024,        # safe on v5e/v6e/v7x
        ),
    )(x2d)

    return out2d.reshape(x.shape)


if __name__ == "__main__":
    # Module config (IdentityProjection has no learnable parameters).
    proj_width = 32      # dim
    num_heads = 4
    num_groups = 2
    heads_per_group = num_heads // num_groups  # hpg = 2

    batch = 2
    seq = 8
    dim = proj_width

    key = jax.random.PRNGKey(0)
    k_x, k_sid = jax.random.split(key)
    x = jax.random.normal(
        k_x, (batch, num_groups, heads_per_group, seq, dim), dtype=jnp.float32
    )
    # seq_id is accepted but unused by the module.
    seq_id = jax.random.randint(k_sid, (batch, 1, 1, seq), 0, seq, dtype=jnp.int32)

    # Zero-cost path (what a real model should use): plain identity, no copy.
    out_fast = identity_projection(x, seq_id)

    # Pallas kernel path (materializes a fresh buffer via the copy kernel).
    out = identity_projection(x, seq_id, materialize=True)
    out = jax.block_until_ready(out)

    assert out_fast is x                      # no-op path returns x untouched
    assert out.shape == x.shape
    assert out.dtype == x.dtype
    assert bool(jnp.array_equal(out, x))
    print("KERNEL_OK")
</pallas_src>

<mosaic_0001>
module attributes {stable_mosaic.version = 11 : i64} {
  func.func @_identity_copy_kernel(%arg0: i32, %arg1: memref<1x2048xf32, #tpu.memory_space<vmem>>, %arg2: memref<1x2048xf32, #tpu.memory_space<vmem>>) attributes {dimension_semantics = [#tpu.dimension_semantics<parallel>], iteration_bounds = array<i64: 1>, scalar_prefetch = 0 : i64, scratch_operands = 0 : i64, tpu.core_type = #tpu.core_type<tc>, window_params = [{transform_indices = @transform_0, window_bounds = array<i64: 1, 2048>}, {transform_indices = @transform_1, window_bounds = array<i64: 1, 2048>}]} {
    %c0 = arith.constant 0 : index
    %c0_0 = arith.constant 0 : index
    %0 = vector.load %arg1[%c0, %c0_0] : memref<1x2048xf32, #tpu.memory_space<vmem>>, vector<1x2048xf32>
    %c0_1 = arith.constant 0 : index
    %c0_2 = arith.constant 0 : index
    %1 = vector.load %arg2[%c0_1, %c0_2] : memref<1x2048xf32, #tpu.memory_space<vmem>>, vector<1x2048xf32>
    tpu.vector_store %arg2[%c0_1, %c0_2], %0 {strides = array<i32>} : memref<1x2048xf32, #tpu.memory_space<vmem>>, vector<1x2048xf32>,
    return
  }
  func.func @transform_0(%arg0: i32) -> (i32, i32) {
    %c0_i32 = arith.constant 0 : i32
    %c0_i32_0 = arith.constant 0 : i32
    return %arg0, %c0_i32 : i32, i32
  }
  func.func @transform_1(%arg0: i32) -> (i32, i32) {
    %c0_i32 = arith.constant 0 : i32
    %c0_i32_0 = arith.constant 0 : i32
    return %arg0, %c0_i32 : i32, i32
  }
}

</mosaic_0001>

<bundles_post_ra>
// kernel: tpu_custom_call.1
= control target key start
LH: loop header
LB: loop body
LE: loop exit
PB: predicated region body
PF: predicated region fallthrough
CT: control target
= control target key end

     0   :  { %6 = vsyncpa [#allocation3], 0  ;;  %s126_s0 = inlined_call_operand.hbm [shape: f32[1,2048], index: 0, kind: input, shape index: {}]   ;;  %s127_s1 = inlined_call_operand.hbm [shape: f32[1,2048], index: 1, kind: output, shape index: {}]  }
   0x1   :  { %7 = vsyncpa [#allocation4], 0  ;;  %s90_s6 = smov [#allocation2]   ;;  %s42_s10 = scalar_lea.hbm %s126_s0, 256 }
   0x2   :  { %s14_s7 = sshll.u32 %s90_s6, 4  ;;  %p43_p0 = scmp.ne.s32.totalorder %s126_s0, %s42_s10  ;;  %s15_s7 = int_to_ptr.vmem [resolvable:$true] %s14_s7 }
   0x3   :  { %p46_p1 = scmp.lt.u32.totalorder %s42_s10, %s126_s0 }
   0x5   :  { %p48_p2 = pnand %p46_p1, %p43_p0 }
   0x7   :  { %51 = shalt.err (!%p48_p2)
}
   0x8   :  { %s52_s15 = scalar_lea.vmem %s15_s7, 256  ;;  %p57_p4 = scmp.lt.s32.totalorder %s15_s7, %s15_s7 }
   0x9   :  { %p53_p3 = scmp.ne.s32.totalorder %s15_s7, %s52_s15  ;;  %p58_p5 = scmp.lt.s32.totalorder %s52_s15, %s52_s15 }
   0xb   :  { %p59_p6 = por %p58_p5, %p57_p4 }
   0xd   :  { %p60_p7 = pnand %p59_p6, %p53_p3 }
   0xf   :  { %63 = shalt.err (!%p60_p7)
}
  0x10   :  { %17 = dma.hbm_to_vmem [thread:$0]  %s126_s0, 256, %s15_s7, [#allocation3]  }
  0x11   :  { %86 = dma.done.wait [#allocation3], 256  }
  0x12   :  { %87 = vsyncadd [#allocation3], 4294967040  ;;  %s91_s18 = smov [#allocation5]   ;;  %v21_v0 = vld [vmem:[#allocation2] sm:$0xff]  ;;  %v22_v1 = vld [vmem:[#allocation2 + $0x8] sm:$0xff] }
  0x13   :  { %s31_s19 = sshll.u32 %s91_s18, 4  ;;  %23 = vst [vmem:[#allocation5] sm:$0xff] %v21_v0  ;;  %24 = vst [vmem:[#allocation5 + $0x8] sm:$0xff] %v22_v1  ;;  %s32_s19 = int_to_ptr.vmem [resolvable:$true] %s31_s19 }
  0x14   :  { %s64_s20 = scalar_lea.vmem %s32_s19, 256  ;;  %p69_p9 = scmp.lt.s32.totalorder %s32_s19, %s32_s19 }
  0x15   :  { %p65_p8 = scmp.ne.s32.totalorder %s32_s19, %s64_s20  ;;  %p70_p10 = scmp.lt.s32.totalorder %s64_s20, %s64_s20 }
  0x17   :  { %p71_p11 = por %p70_p10, %p69_p9 }
  0x19   :  { %p72_p12 = pnand %p71_p11, %p65_p8 }
  0x1b   :  { %75 = shalt.err (!%p72_p12)
}
  0x1c   :  { %s76_s0 = scalar_lea.hbm %s127_s1, 256 }
  0x1d   :  { %p77_p13 = scmp.ne.s32.totalorder %s127_s1, %s76_s0  ;;  %p80_p0 = scmp.lt.u32.totalorder %s76_s0, %s127_s1 }
  0x1f   :  { %p82_p1 = pnand %p80_p0, %p77_p13 }
  0x21   :  { %85 = shalt.err (!%p82_p1)
}
  0x22   :  { %34 = dma.vmem_to_hbm [thread:$0]  %s32_s19, 256, %s127_s1, [#allocation4]  }
  0x23   :  { %88 = dma.done.wait [#allocation4], 256  }
  0x24   :  { %89 = vsyncadd [#allocation4], 4294967040 }
  0x25   :  { %38 = vsyncpa [#allocation3], 1 }
  0x26   :  { %39 = vsyncpa [#allocation4], 1 }

</bundles_post_ra>
